<compile_context>
chip_gen: v7x
topology: tpu7x:2x2x1
jax: 0.10.0
libtpu: 0.0.40
codegen_flags: <defaults>
</compile_context>

<pallas_src>
import functools

import jax
import jax.numpy as jnp
from jax import lax
from jax.experimental import pallas as pl
from jax.experimental.pallas import tpu as pltpu


# --------------------------------------------------------------------------- #
# helpers
# --------------------------------------------------------------------------- #
def _round_up(x, m):
    return ((x + m - 1) // m) * m


def _vmem_limit(block_bytes):
    # blocks are double-buffered by the pipeline; add headroom, clamp to a
    # range that is valid on v5e / v6e / v7x.
    est = 2 * int(block_bytes) + (8 << 20)
    return int(min(max(est, 32 << 20), 64 << 20))


# --------------------------------------------------------------------------- #
# Linear kernel:  Y = X @ W + b   (bf16 operands, f32 accumulation)
# --------------------------------------------------------------------------- #
def _linear_kernel(x_ref, w_ref, b_ref, o_ref):
    x = x_ref[...].astype(jnp.bfloat16)          # bf16 MXU operand
    acc = jnp.dot(x, w_ref[...], preferred_element_type=jnp.float32)
    o_ref[...] = (acc + b_ref[...]).astype(o_ref.dtype)


def _linear(x2d, w_bf16, bias_f32):
    """x2d: (M, K); w_bf16: (K, Kout) bf16; bias_f32: (1, Kout) f32 -> (M, Kout) f32."""
    M, K = x2d.shape
    Kout = w_bf16.shape[1]

    tm = min(256, _round_up(M, 8))
    Mp = _round_up(M, tm)
    if Mp != M:
        x2d = jnp.pad(x2d, ((0, Mp - M), (0, 0)))

    block_bytes = (tm * K * x2d.dtype.itemsize          # x tile
                   + K * Kout * 2                       # bf16 weight
                   + Kout * 4                           # bias
                   + tm * Kout * 4)                     # f32 out tile

    # NOTE: the weight / bias index_maps are constant, so Pallas only DMAs
    # them once.  (pl.Buffered(1) would also drop the second weight buffer on
    # v7x, left out here for portability.)
    y = pl.pallas_call(
        _linear_kernel,
        out_shape=jax.ShapeDtypeStruct((Mp, Kout), jnp.float32),
        grid_spec=pltpu.PrefetchScalarGridSpec(
            num_scalar_prefetch=0,
            grid=(Mp // tm,),
            in_specs=[
                pl.BlockSpec((tm, K), lambda i: (i, 0)),
                pl.BlockSpec((K, Kout), lambda i: (0, 0)),
                pl.BlockSpec((1, Kout), lambda i: (0, 0)),
            ],
            out_specs=pl.BlockSpec((tm, Kout), lambda i: (i, 0)),
        ),
        compiler_params=pltpu.CompilerParams(
            dimension_semantics=("parallel",),
            vmem_limit_bytes=_vmem_limit(block_bytes)),
    )(x2d, w_bf16, bias_f32)

    return y[:M] if Mp != M else y


# --------------------------------------------------------------------------- #
# Flash-style attention kernel (online softmax over KV tiles)
# --------------------------------------------------------------------------- #
def _flash_kernel(q_ref, k_ref, v_ref, o_ref, m_sc, l_sc, acc_sc,
                  *, kv_len, need_mask):
    ki = pl.program_id(3)

    @pl.when(ki == 0)
    def _init():
        m_sc[...] = jnp.full_like(m_sc, -jnp.inf)
        l_sc[...] = jnp.zeros_like(l_sc)
        acc_sc[...] = jnp.zeros_like(acc_sc)

    q = q_ref[0, 0]                       # (tq, D) bf16, scale already folded in
    k = k_ref[0, 0]                       # (tk, D) bf16
    v = v_ref[0, 0]                       # (tk, D) bf16

    # scores: q @ k^T, contraction over head_dim on the MXU, f32 accumulation.
    s = lax.dot_general(q, k, (((1,), (1,)), ((), ())),
                        preferred_element_type=jnp.float32)   # (tq, tk) f32

    if need_mask:
        blk_k = s.shape[1]
        col = ki * blk_k + lax.broadcasted_iota(jnp.int32, s.shape, 1)
        s = jnp.where(col < kv_len, s, -jnp.inf)

    m_prev = m_sc[...]                                        # (tq, 1) f32
    m_new = jnp.maximum(m_prev, jnp.max(s, axis=-1, keepdims=True))
    alpha = jnp.exp(m_prev - m_new)
    p = jnp.exp(s - m_new)                                    # (tq, tk) f32
    l_sc[...] = alpha * l_sc[...] + jnp.sum(p, axis=-1, keepdims=True)
    acc_sc[...] = alpha * acc_sc[...] + lax.dot_general(
        p.astype(v.dtype), v, (((1,), (0,)), ((), ())),
        preferred_element_type=jnp.float32)                   # (tq, D) f32
    m_sc[...] = m_new

    @pl.when(ki == pl.num_programs(3) - 1)
    def _finalize():
        inv_l = pl.reciprocal(l_sc[...], approx=True)         # EUP, nearly free
        o_ref[0, 0] = (acc_sc[...] * inv_l).astype(o_ref.dtype)


def _flash_attention(q, k, v, *, tq, tk, seq_len):
    """q/k/v: (B, H, N_pad, D) bf16 (scale folded into q) -> (B, H, N_pad, D) bf16."""
    B, H, Np, D = q.shape
    kernel = functools.partial(_flash_kernel, kv_len=seq_len,
                               need_mask=(Np != seq_len))

    block_bytes = (tq * D * 2            # q tile (bf16)
                   + 2 * tk * D * 2      # k, v tiles
                   + tq * D * 2          # out tile
                   + 2 * tq * 4          # m, l scratch
                   + tq * D * 4)         # acc scratch

    return pl.pallas_call(
        kernel,
        out_shape=jax.ShapeDtypeStruct((B, H, Np, D), jnp.bfloat16),
        grid_spec=pltpu.PrefetchScalarGridSpec(
            num_scalar_prefetch=0,
            grid=(B, H, Np // tq, Np // tk),
            in_specs=[
                pl.BlockSpec((1, 1, tq, D), lambda b, h, qi, ki: (b, h, qi, 0)),
                pl.BlockSpec((1, 1, tk, D), lambda b, h, qi, ki: (b, h, ki, 0)),
                pl.BlockSpec((1, 1, tk, D), lambda b, h, qi, ki: (b, h, ki, 0)),
            ],
            out_specs=pl.BlockSpec((1, 1, tq, D),
                                   lambda b, h, qi, ki: (b, h, qi, 0)),
            scratch_shapes=[
                pltpu.VMEM((tq, 1), jnp.float32),   # running max m
                pltpu.VMEM((tq, 1), jnp.float32),   # running sum l
                pltpu.VMEM((tq, D), jnp.float32),   # output accumulator
            ],
        ),
        compiler_params=pltpu.CompilerParams(
            # 3 independent axes -> megacore / dual-TC sharding; KV reduction last.
            dimension_semantics=("parallel", "parallel", "parallel", "arbitrary"),
            vmem_limit_bytes=_vmem_limit(block_bytes)),
    )(q, k, v)


# --------------------------------------------------------------------------- #
# Full module forward
# --------------------------------------------------------------------------- #
def attention_forward(x, wqkv_t, wproj_t, bproj, *, num_heads):
    """x: (B, N, C) f32; wqkv_t: (C, 3C); wproj_t: (C, C); bproj: (1, C)."""
    B, N, C = x.shape
    H = num_heads
    D = C // H
    scale = D ** (-0.5)

    # bf16 weights: half the HBM traffic / VMEM footprint, MXU runs at bf16 rate.
    wqkv_bf = wqkv_t.astype(jnp.bfloat16)
    wproj_bf = wproj_t.astype(jnp.bfloat16)

    # 1) fused QKV projection as one wide matmul (qkv_bias=False -> zero bias).
    qkv = _linear(x.reshape(B * N, C), wqkv_bf,
                  jnp.zeros((1, 3 * C), jnp.float32))           # (B*N, 3C) f32
    qkv = qkv.reshape(B, N, 3, H, D)

    # Head split / (B, H, N, D) layout done in the wrapper (XLA layout plumbing)
    # so the kernels contain no XLU transposes.  Scale folded into q in f32.
    q = jnp.transpose(qkv[:, :, 0], (0, 2, 1, 3)) * scale
    k = jnp.transpose(qkv[:, :, 1], (0, 2, 1, 3))
    v = jnp.transpose(qkv[:, :, 2], (0, 2, 1, 3))
    q = q.astype(jnp.bfloat16)
    k = k.astype(jnp.bfloat16)
    v = v.astype(jnp.bfloat16)

    # 2) flash-style attention; pad N to a tile multiple, mask padding in-kernel.
    t = min(128, _round_up(N, 8))
    n_pad = _round_up(N, t)
    if n_pad != N:
        pad = ((0, 0), (0, 0), (0, n_pad - N), (0, 0))
        q = jnp.pad(q, pad)
        k = jnp.pad(k, pad)
        v = jnp.pad(v, pad)
    o = _flash_attention(q, k, v, tq=t, tk=t, seq_len=N)        # (B, H, n_pad, D)
    o = o[:, :, :N, :]
    o = jnp.transpose(o, (0, 2, 1, 3)).reshape(B * N, C)

    # 3) output projection + bias.  attn_drop / proj_drop: p = 0.0 -> identity.
    y = _linear(o, wproj_bf, bproj)                             # (B*N, C) f32
    return y.reshape(B, N, C)


def attention_reference(x, wqkv_t, wproj_t, bproj, *, num_heads):
    """Plain-JAX f32 reference matching the PyTorch module semantics."""
    B, N, C = x.shape
    H = num_heads
    D = C // H
    scale = D ** (-0.5)
    qkv = jnp.einsum('bnc,cd->bnd', x, wqkv_t)                  # (B, N, 3C)
    qkv = qkv.reshape(B, N, 3, H, D).transpose(2, 0, 3, 1, 4)   # (3, B, H, N, D)
    q, k, v = qkv[0], qkv[1], qkv[2]
    attn = jnp.einsum('bhnd,bhmd->bhnm', q, k) * scale
    attn = jax.nn.softmax(attn, axis=-1)
    out = jnp.einsum('bhnm,bhmd->bhnd', attn, v)
    out = out.transpose(0, 2, 1, 3).reshape(B, N, C)
    out = jnp.einsum('bnc,cd->bnd', out, wproj_t) + bproj[0]
    return out


if __name__ == "__main__":
    # Small shapes consistent with the module: B=2, N=8 tokens, C=32 channels.
    B, N, C = 2, 8, 32
    num_heads = 8          # module default; head_dim = 4

    key = jax.random.PRNGKey(0)
    k_x, k_wqkv, k_wproj, k_bproj = jax.random.split(key, 4)

    x = jax.random.normal(k_x, (B, N, C), dtype=jnp.float32)
    bound = 1.0 / (C ** 0.5)
    wqkv_t = jax.random.uniform(k_wqkv, (C, 3 * C), minval=-bound,
                                maxval=bound, dtype=jnp.float32)
    wproj_t = jax.random.uniform(k_wproj, (C, C), minval=-bound,
                                 maxval=bound, dtype=jnp.float32)
    bproj = jax.random.uniform(k_bproj, (1, C), minval=-bound,
                               maxval=bound, dtype=jnp.float32)

    out = attention_forward(x, wqkv_t, wproj_t, bproj, num_heads=num_heads)
    out = jax.block_until_ready(out)

    ref = attention_reference(x, wqkv_t, wproj_t, bproj, num_heads=num_heads)
    assert out.shape == (B, N, C)
    # bf16 MXU operands (with f32 accumulation / f32 softmax stats) loosen the
    # tolerance vs the pure-f32 reference.
    max_err = float(jnp.max(jnp.abs(out - ref)))
    assert jnp.allclose(out, ref, atol=3e-2, rtol=3e-2), \
        f"mismatch vs reference (max abs err {max_err})"

    print("KERNEL_OK")
</pallas_src>

<mosaic_0001>
module attributes {stable_mosaic.version = 11 : i64} {
  func.func @_linear_kernel(%arg0: i32, %arg1: memref<16x32xf32, #tpu.memory_space<vmem>>, %arg2: memref<32x96xbf16, #tpu.memory_space<vmem>>, %arg3: memref<1x96xf32, #tpu.memory_space<vmem>>, %arg4: memref<16x96xf32, #tpu.memory_space<vmem>>) attributes {dimension_semantics = [#tpu.dimension_semantics<parallel>], iteration_bounds = array<i64: 1>, scalar_prefetch = 0 : i64, scratch_operands = 0 : i64, tpu.core_type = #tpu.core_type<tc>, window_params = [{transform_indices = @transform_0, window_bounds = array<i64: 16, 32>}, {pipeline_mode = #tpu.pipeline_mode<synchronous>, transform_indices = @transform_1, window_bounds = array<i64: 32, 96>}, {pipeline_mode = #tpu.pipeline_mode<synchronous>, transform_indices = @transform_2, window_bounds = array<i64: 1, 96>}, {transform_indices = @transform_3, window_bounds = array<i64: 16, 96>}]} {
    %c0 = arith.constant 0 : index
    %c0_0 = arith.constant 0 : index
    %0 = vector.load %arg1[%c0, %c0_0] : memref<16x32xf32, #tpu.memory_space<vmem>>, vector<16x32xf32>
    %1 = arith.truncf %0 : vector<16x32xf32> to vector<16x32xbf16>
    %c0_1 = arith.constant 0 : index
    %c0_2 = arith.constant 0 : index
    %2 = vector.load %arg2[%c0_1, %c0_2] : memref<32x96xbf16, #tpu.memory_space<vmem>>, vector<32x96xbf16>
    %cst = arith.constant dense<0.000000e+00> : vector<16x96xf32>
    %3 = tpu.matmul %1, %2, %cst {dimension_numbers = #tpu.dot_dimension_numbers<[1], [0], [0], [1], [0, 0, 1, 1], [], []>} : vector<16x32xbf16>, vector<32x96xbf16>, vector<16x96xf32> -> vector<16x96xf32>
    %c0_3 = arith.constant 0 : index
    %c0_4 = arith.constant 0 : index
    %4 = vector.load %arg3[%c0_3, %c0_4] : memref<1x96xf32, #tpu.memory_space<vmem>>, vector<1x96xf32>
    %5 = vector.broadcast %4 : vector<1x96xf32> to vector<16x96xf32>
    %6 = arith.addf %3, %5 : vector<16x96xf32>
    %c0_5 = arith.constant 0 : index
    %c0_6 = arith.constant 0 : index
    %7 = vector.load %arg4[%c0_5, %c0_6] : memref<16x96xf32, #tpu.memory_space<vmem>>, vector<16x96xf32>
    tpu.vector_store %arg4[%c0_5, %c0_6], %6 {strides = array<i32>} : memref<16x96xf32, #tpu.memory_space<vmem>>, vector<16x96xf32>,
    return
  }
  func.func @transform_0(%arg0: i32) -> (i32, i32) {
    %c0_i32 = arith.constant 0 : i32
    %c0_i32_0 = arith.constant 0 : i32
    return %arg0, %c0_i32 : i32, i32
  }
  func.func @transform_1(%arg0: i32) -> (i32, i32) {
    %c0_i32 = arith.constant 0 : i32
    %c0_i32_0 = arith.constant 0 : i32
    %c0_i32_1 = arith.constant 0 : i32
    return %c0_i32, %c0_i32_0 : i32, i32
  }
  func.func @transform_2(%arg0: i32) -> (i32, i32) {
    %c0_i32 = arith.constant 0 : i32
    %c0_i32_0 = arith.constant 0 : i32
    %c0_i32_1 = arith.constant 0 : i32
    return %c0_i32, %c0_i32_0 : i32, i32
  }
  func.func @transform_3(%arg0: i32) -> (i32, i32) {
    %c0_i32 = arith.constant 0 : i32
    %c0_i32_0 = arith.constant 0 : i32
    return %arg0, %c0_i32 : i32, i32
  }
}

</mosaic_0001>

<bundles_post_ra>
// kernel: tpu_custom_call.1
= control target key start
LH: loop header
LB: loop body
LE: loop exit
PB: predicated region body
PF: predicated region fallthrough
CT: control target
= control target key end

     0   :  { %8 = vsyncpa [#allocation3], 0  ;;  %s308_s0 = inlined_call_operand.hbm [shape: f32[16,32], index: 0, kind: input, shape index: {}]   ;;  %s309_s1 = inlined_call_operand.hbm [shape: bf16[32,96], index: 1, kind: input, shape index: {}]   ;;  %s310_s2 = inlined_call_operand.vmem [shape: f32[1,96], index: 2, kind: input, shape index: {}]   ;;  %s311_s3 = inlined_call_operand.hbm [shape: f32[16,96], index: 3, kind: output, shape index: {}]  }
   0x1   :  { %9 = vsyncpa [#allocation6], 0 }
   0x2   :  { %10 = vsyncpa [#allocation4], 0  ;;  %s234_s12 = smov [#allocation2]   ;;  %s162_s16 = scalar_lea.hbm %s308_s0, 256 }
   0x3   :  { %s16_s13 = sshll.u32 %s234_s12, 4  ;;  %p163_p0 = scmp.ne.s32.totalorder %s308_s0, %s162_s16  ;;  %s17_s13 = int_to_ptr.vmem [resolvable:$true] %s16_s13 }
   0x4   :  { %p166_p1 = scmp.lt.u32.totalorder %s162_s16, %s308_s0 }
   0x6   :  { %p168_p2 = pnand %p166_p1, %p163_p0 }
   0x8   :  { %171 = shalt.err (!%p168_p2)
}
   0x9   :  { %s172_s21 = scalar_lea.vmem %s17_s13, 256  ;;  %p177_p4 = scmp.lt.s32.totalorder %s17_s13, %s17_s13 }
   0xa   :  { %p173_p3 = scmp.ne.s32.totalorder %s17_s13, %s172_s21  ;;  %p178_p5 = scmp.lt.s32.totalorder %s172_s21, %s172_s21 }
   0xc   :  { %p179_p6 = por %p178_p5, %p177_p4 }
   0xe   :  { %p180_p7 = pnand %p179_p6, %p173_p3 }
  0x10   :  { %183 = shalt.err (!%p180_p7)
}
  0x11   :  { %s235_s22 = smov 128   ;;  %s236_s23 = smov 8  }
  0x12   :  { %22 = dma.hbm_to_vmem [thread:$0]  %s308_s0, 256, %s17_s13, [#allocation3], %s235_s22, %s235_s22, %s236_s23  }
  0x13   :  { %s237_s26 = smov [#allocation5]   ;;  %s184_s30 = scalar_lea.hbm %s309_s1, 256 }
  0x14   :  { %s28_s27 = sshll.u32 %s237_s26, 4  ;;  %p185_p8 = scmp.ne.s32.totalorder %s309_s1, %s184_s30  ;;  %s29_s27 = int_to_ptr.vmem [resolvable:$true] %s28_s27 }
  0x15   :  { %p188_p9 = scmp.lt.u32.totalorder %s184_s30, %s309_s1 }
  0x17   :  { %p190_p10 = pnand %p188_p9, %p185_p8 }
  0x19   :  { %193 = shalt.err (!%p190_p10)
}
  0x1a   :  { %s194_s8 = scalar_lea.vmem %s29_s27, 256  ;;  %p199_p12 = scmp.lt.s32.totalorder %s29_s27, %s29_s27 }
  0x1b   :  { %p195_p11 = scmp.ne.s32.totalorder %s29_s27, %s194_s8  ;;  %p200_p13 = scmp.lt.s32.totalorder %s194_s8, %s194_s8 }
  0x1d   :  { %p201_p0 = por %p200_p13, %p199_p12 }
  0x1f   :  { %p202_p1 = pnand %p201_p0, %p195_p11 }
  0x21   :  { %205 = shalt.err (!%p202_p1)
}
  0x22   :  { %s238_s0 = smov 64   ;;  %s239_s9 = smov 4  }
  0x23   :  { %34 = dma.hbm_to_vmem [thread:$0]  %s309_s1, 256, %s29_s27, [#allocation6], %s238_s0, %s238_s0, %s239_s9  }
  0x24   :  { %228 = dma.done.wait [#allocation3], 256  }
  0x25   :  { %229 = vsyncadd [#allocation3], 4294967040 }
  0x26   :  { %230 = dma.done.wait [#allocation6], 256  }
  0x27   :  { %231 = vsyncadd [#allocation6], 4294967040  ;;  %v240_v0 = vmov 0.0   ;;  %vm241_vm0 = vmmov 0   ;;  %v160_v1 = vld [vmem:[#allocation5] sm:$0xff]   ;;  %v161_v2 = vld [vmem:[#allocation5 + $0x8] sm:$0xff]  }
  0x28   :  { %143 = vmatprep.subr.bf16.mxu0 %v240_v0  ;;  %147 = vmatprep.mubr.msk.bf16.mxu0 %vm241_vm0, %v240_v0  ;;  %v44_v3 = vld [vmem:[#allocation2] sm:$0xff]  ;;  %v45_v4 = vld [vmem:[#allocation2 + $0x8] sm:$0xff]  ;;  %vm70_vm1 = vcmask 261120   ;;  %vm115_vm2 = vcmask 785408   ;;  %s242_s13 = smov [#allocation7]  }
  0x29   :  { %144 = vmatpush3.bf16.msra.mxu0 %v160_v1  ;;  %v46_v5 = vpack.c.bf16 %v45_v4, %v44_v3  ;;  %v136_v6 = vld [vmem:[%s310_s2] ss:$0 sm:$0xff]  ;;  %s123_s14 = sshll.u32 %s242_s13, 4  ;;  %s124_s14 = int_to_ptr.vmem [resolvable:$true] %s123_s14 }
  0x2a   :  { %145 = vmatprep.subr.bf16.mxu0 %v240_v0  ;;  %s206_s15 = scalar_lea.vmem %s124_s14, 256  ;;  %p211_p3 = scmp.lt.s32.totalorder %s124_s14, %s124_s14 }
  0x2b   :  { %p207_p2 = scmp.ne.s32.totalorder %s124_s14, %s206_s15  ;;  %p212_p4 = scmp.lt.s32.totalorder %s206_s15, %s206_s15 }
  0x2d   :  { %146 = vmatpush3.bf16.msra.mxu0 %v161_v2  ;;  %p213_p5 = por %p212_p4, %p211_p3 }
  0x2f   :  { %p214_p6 = pnand %p213_p5, %p207_p2 }
  0x30   :  { %148 = vmatmul.mubr.msk.bf16.vlgmr.msra.gmra.mrb[0].mxu0 %vm70_vm1, %v46_v5 }
 0x103   :  { %v108_v7 = vpop.f32.mrb[0].mxu0 }
 0x104   :  { %v109_v8 = vadd.f32 %v136_v6, %v108_v7  ;;  %v149_v9 = vpop.f32.mrb[1].mxu0 }
 0x105   :  { %v111_v10 = vpop.f32.mrb[2].mxu0 }
 0x106   :  { %v112_v11 = vadd.f32 %v136_v6, %v111_v10  ;;  %v150_v12 = vpop.f32.mrb[3].mxu0  ;;  %116 = vst.msk [vmem:[#allocation7] sm:$0xff] %vm115_vm2, %v109_v8 }
 0x108   :  { %117 = vst.msk [vmem:[#allocation7 + $0x8] sm:$0xff] %vm115_vm2, %v112_v11 }
 0x109   :  { %217 = shalt.err (!%p214_p6)
}
 0x10a   :  { %s218_s17 = scalar_lea.hbm %s311_s3, 256 }
 0x10b   :  { %p219_p7 = scmp.ne.s32.totalorder %s311_s3, %s218_s17  ;;  %p222_p8 = scmp.lt.u32.totalorder %s218_s17, %s311_s3 }
 0x10d   :  { %p224_p9 = pnand %p222_p8, %p219_p7 }
 0x10f   :  { %227 = shalt.err (!%p224_p9)
}
 0x110   :  { %129 = dma.vmem_to_hbm [thread:$0]  %s124_s14, 256, %s311_s3, [#allocation4], %s235_s22, %s235_s22, %s236_s23  }
 0x111   :  { %232 = dma.done.wait [#allocation4], 256  }
 0x112   :  { %233 = vsyncadd [#allocation4], 4294967040 }
 0x113   :  { %133 = vsyncpa [#allocation3], 1 }
 0x114   :  { %134 = vsyncpa [#allocation6], 1 }
 0x115   :  { %135 = vsyncpa [#allocation4], 1 }

</bundles_post_ra>
